<compile_context>
chip_gen: v6e
topology: v6e:2x2x1
jax: 0.10.0
libtpu: 0.0.40
codegen_flags: <defaults>
</compile_context>

<pallas_src>
import jax
import jax.numpy as jnp
from jax.experimental import pallas as pl
from jax.experimental.pallas import tpu as pltpu


# ----------------------------------------------------------------------------
# chip-aware VMEM budgeting
# ----------------------------------------------------------------------------
def _detect_vmem_capacity_bytes():
    try:
        cap = int(pltpu.get_tpu_info().vmem_capacity_bytes)
        if cap > 0:
            return cap
    except Exception:
        pass
    return 64 * 1024 * 1024          # conservative (v7x-sized) fallback


_VMEM_CAPACITY = _detect_vmem_capacity_bytes()
# Raise the scoped limit above the 16/32 MiB defaults (bigger tiles, fewer
# ~0.35us grid steps) while leaving headroom under physical capacity
# (64 MiB on v7x, 128 MiB on v5e/v6e) for Mosaic-internal scratch.
_VMEM_LIMIT = min(int(_VMEM_CAPACITY * 0.75), 100 * 1024 * 1024)
_VMEM_BUDGET = int(_VMEM_LIMIT * 0.8)     # target for per-step working sets


# ----------------------------------------------------------------------------
# tiling helpers
# ----------------------------------------------------------------------------
def _round_up(x, m):
    return ((x + m - 1) // m) * m


def _tile_options(dim, target, aligns=(8,)):
    """Divisors of `dim` that are <= target, preferring the alignments in
    order (descending within each alignment); always ends with `dim` itself
    (a full-dim block is always legal)."""
    opts = []
    cap = min(dim, target)
    for align in aligns:
        t = (cap // align) * align
        while t >= align:
            if dim % t == 0 and t not in opts:
                opts.append(t)
            t -= align
    if dim not in opts:
        opts.append(dim)
    return opts


def _legal_head_blocks(bh, hd):
    """Head-group sizes that divide batch*heads and give legal block shapes:
    (tq, hb, hd) needs hb % 8 == 0 (or hb == bh), and the lane-dense output
    block (tq, hb*hd) needs hb*hd % 128 == 0 (or hb == bh)."""
    out = []
    for hb in range(bh, 0, -1):
        if bh % hb:
            continue
        if hb == bh or (hb % 8 == 0 and (hb * hd) % 128 == 0):
            out.append(hb)
    return out                       # descending


def _plan_weights_attn(bh, hd, t, s, in_isz, out_isz, budget):
    """Pick (head_block, tq) for the weights-returning kernel.  The budget
    accounts for the [hb,tq,s] f32 intermediates (scores/p/probs) and the
    double-buffered f32 weights output block (review fix)."""
    hb_opts = _legal_head_blocks(bh, hd)
    tq_opts = _tile_options(t, 256, (8,))

    def step_bytes(hb, tq):
        io = 2 * (tq + 2 * s) * hb * hd * in_isz        # q, k, v (double buf)
        io += 2 * tq * hb * hd * out_isz                # attention output
        io += 2 * hb * tq * s * 4                       # f32 weights output
        inter = 4 * hb * tq * s * 4 + hb * tq * hd * 4  # f32 intermediates
        return io + inter

    best = None
    for hb in hb_opts:
        for tq in tq_opts:
            if step_bytes(hb, tq) > budget:
                continue
            steps = (bh // hb) * (t // tq)
            # Prefer >=2 grid steps (v7x has 2 TensorCores), then big blocks.
            key = (steps >= 2, hb, tq)
            if best is None or key > best[0]:
                best = (key, hb, tq)
    if best is None:
        return hb_opts[-1], min(tq_opts)
    return best[1], best[2]


def _plan_flash_attn(bh, hd, t, s, in_isz, out_isz, budget):
    """Pick (head_block, tq, kv_block) for the flash kernel."""
    hb_opts = _legal_head_blocks(bh, hd)
    tq_opts = _tile_options(t, 256, (8,))
    tk_opts = _tile_options(s, 1024, (256, 128))

    def step_bytes(hb, tq, tk):
        io = 2 * (tq + 2 * tk) * hb * hd * in_isz       # q, k, v (double buf)
        io += 2 * tq * hb * hd * out_isz                # output
        scratch = 2 * hb * tq * 128 * 4 + hb * tq * hd * 4   # m,l (lane-padded) + acc
        inter = 3 * hb * tq * tk * 4 + hb * tq * hd * 4      # f32 intermediates
        return io + scratch + inter

    best = None
    for hb in hb_opts:
        for tq in tq_opts:
            for tk in tk_opts:
                if step_bytes(hb, tq, tk) > budget:
                    continue
                par_steps = (bh // hb) * (t // tq)
                # Prefer >=2 parallel steps (v7x), then the biggest KV tile
                # (fewest online-softmax rescale passes), then big blocks.
                key = (par_steps >= 2, tk, hb * tq, hb)
                if best is None or key > best[0]:
                    best = (key, hb, tq, tk)
    if best is None:
        return hb_opts[-1], min(tq_opts), min(tk_opts)
    return best[1], best[2], best[3]


# ----------------------------------------------------------------------------
# tiled linear: o = x @ w_t + b   (w_t already [Din, Dout], b is [1, Dout] f32)
# ----------------------------------------------------------------------------
def _linear_kernel(x_ref, w_ref, b_ref, o_ref, acc_ref):
    @pl.when(pl.program_id(2) == 0)
    def _():
        acc_ref[...] = jnp.zeros_like(acc_ref)

    acc_ref[...] += jnp.dot(
        x_ref[...], w_ref[...], preferred_element_type=jnp.float32
    )

    @pl.when(pl.program_id(2) == pl.num_programs(2) - 1)
    def _():
        o_ref[...] = (
            acc_ref[...] + b_ref[...].astype(jnp.float32)
        ).astype(o_ref.dtype)


def linear(x, w_t, b, *, out_dtype=None, tm=512, tn=512, tk=512):
    m, kdim = x.shape
    n = w_t.shape[1]
    out_dtype = out_dtype or x.dtype
    in_isz = jnp.dtype(x.dtype).itemsize
    w_isz = jnp.dtype(w_t.dtype).itemsize
    out_isz = jnp.dtype(out_dtype).itemsize

    # M tile: use an aligned divisor when one exists; otherwise pad M so the
    # target tile divides it (never a single huge full-M block).
    if m % 8 == 0 and m <= 2 * tm:
        tm_eff = _tile_options(m, tm, (256, 128, 8))[0]
        m_pad = m
    else:
        tm_eff = min(tm, _round_up(m, 8))
        m_pad = _round_up(m, tm_eff)

    # N / K tiles: prefer MXU-width (256) multiples, then 128, else full dim;
    # shrink until the double-buffered working set fits the VMEM budget.
    tn_opts = _tile_options(n, tn, (256, 128))
    tk_opts = _tile_options(kdim, tk, (256, 128))

    def step_bytes(tn_c, tk_c):
        return (2 * (tm_eff * tk_c * in_isz + tk_c * tn_c * w_isz + tn_c * 4)
                + 2 * tm_eff * tn_c * out_isz
                + tm_eff * tn_c * 4)                    # f32 accumulator

    tn_eff, tk_eff = min(tn_opts), min(tk_opts)
    done = False
    for tn_c in tn_opts:
        for tk_c in tk_opts:
            if step_bytes(tn_c, tk_c) <= _VMEM_BUDGET:
                tn_eff, tk_eff = tn_c, tk_c
                done = True
                break
        if done:
            break

    if m_pad != m:
        x = jnp.pad(x, ((0, m_pad - m), (0, 0)))

    grid = (m_pad // tm_eff, n // tn_eff, kdim // tk_eff)
    cost = pl.CostEstimate(
        flops=2 * m_pad * n * kdim,
        transcendentals=0,
        bytes_accessed=(m_pad * kdim * in_isz + kdim * n * w_isz
                        + n * 4 + m_pad * n * out_isz),
    )
    out = pl.pallas_call(
        _linear_kernel,
        out_shape=jax.ShapeDtypeStruct((m_pad, n), out_dtype),
        grid=grid,
        in_specs=[
            pl.BlockSpec((tm_eff, tk_eff), lambda i, j, k: (i, k)),
            pl.BlockSpec((tk_eff, tn_eff), lambda i, j, k: (k, j)),
            pl.BlockSpec((1, tn_eff), lambda i, j, k: (0, j)),
        ],
        out_specs=pl.BlockSpec((tm_eff, tn_eff), lambda i, j, k: (i, j)),
        scratch_shapes=[pltpu.VMEM((tm_eff, tn_eff), jnp.float32)],
        compiler_params=pltpu.CompilerParams(
            dimension_semantics=("parallel", "parallel", "arbitrary"),
            vmem_limit_bytes=_VMEM_LIMIT,
        ),
        cost_estimate=cost,
    )(x, w_t, b)
    return out[:m] if m_pad != m else out


# ----------------------------------------------------------------------------
# attention, full-S variant (returns exact f32 per-head softmax weights)
#   q: [T, BH, Hd], k/v: [S, BH, Hd] -> out [T, BH*Hd], weights [BH, T, S]
# ----------------------------------------------------------------------------
def _attn_weights_kernel(q_ref, k_ref, v_ref, o_ref, w_ref):
    tq, hb, hd = q_ref.shape
    q = q_ref[...]                       # [Tq, Hb, Hd]  (1/sqrt(hd) folded in)
    k = k_ref[...]                       # [S,  Hb, Hd]
    v = v_ref[...]
    # NOTE: batched-dot with the head axis in the middle lowered cleanly in
    # the bundle; switch to an explicit head-leading einshape if relayouts
    # ever show up for other shapes.
    scores = jnp.einsum(
        "thd,shd->hts", q, k, preferred_element_type=jnp.float32
    )                                    # [Hb, Tq, S]
    m = jnp.max(scores, axis=-1, keepdims=True)
    p = jnp.exp(scores - m)
    l = jnp.sum(p, axis=-1, keepdims=True)
    probs = p / l                        # exact divide: returned rows sum to 1
    w_ref[...] = probs.astype(w_ref.dtype)
    out = jnp.einsum(
        "hts,shd->htd", probs.astype(v.dtype), v,
        preferred_element_type=jnp.float32,
    )                                    # [Hb, Tq, Hd] f32
    # Single lane-dense store: pack heads along the lane axis and write once.
    o_ref[...] = jnp.concatenate(
        [out[h] for h in range(hb)], axis=-1
    ).astype(o_ref.dtype)


def attention_with_weights(q, k, v):
    t, bh, hd = q.shape
    s = k.shape[0]
    in_isz = jnp.dtype(q.dtype).itemsize
    out_isz = in_isz
    hb, tq = _plan_weights_attn(bh, hd, t, s, in_isz, out_isz, _VMEM_BUDGET)
    grid = (bh // hb, t // tq)
    cost = pl.CostEstimate(
        flops=4 * bh * t * s * hd,
        transcendentals=bh * t * s,
        bytes_accessed=(bh * (t + 2 * s) * hd * in_isz
                        + bh * t * hd * out_isz + bh * t * s * 4),
    )
    return pl.pallas_call(
        _attn_weights_kernel,
        out_shape=(
            jax.ShapeDtypeStruct((t, bh * hd), q.dtype),
            jax.ShapeDtypeStruct((bh, t, s), jnp.float32),
        ),
        grid=grid,
        in_specs=[
            pl.BlockSpec((tq, hb, hd), lambda i, j: (j, i, 0)),
            pl.BlockSpec((s, hb, hd), lambda i, j: (0, i, 0)),
            pl.BlockSpec((s, hb, hd), lambda i, j: (0, i, 0)),
        ],
        out_specs=(
            pl.BlockSpec((tq, hb * hd), lambda i, j: (j, i)),
            pl.BlockSpec((hb, tq, s), lambda i, j: (i, j, 0)),
        ),
        compiler_params=pltpu.CompilerParams(
            dimension_semantics=("parallel", "parallel"),
            vmem_limit_bytes=_VMEM_LIMIT,
        ),
        cost_estimate=cost,
    )(q, k, v)


# ----------------------------------------------------------------------------
# attention, flash-style hot path (no weights): KV axis tiled, online softmax
# ----------------------------------------------------------------------------
def _flash_kernel(q_ref, k_ref, v_ref, o_ref, m_ref, l_ref, acc_ref):
    tq, hb, hd = q_ref.shape
    kv = pl.program_id(2)

    @pl.when(kv == 0)
    def _():
        m_ref[...] = jnp.full(m_ref.shape, -jnp.inf, jnp.float32)
        l_ref[...] = jnp.zeros(l_ref.shape, jnp.float32)
        acc_ref[...] = jnp.zeros(acc_ref.shape, jnp.float32)

    q = q_ref[...]                       # [Tq, Hb, Hd]
    k = k_ref[...]                       # [Tk, Hb, Hd]
    v = v_ref[...]
    scores = jnp.einsum(
        "thd,shd->hts", q, k, preferred_element_type=jnp.float32
    )                                    # [Hb, Tq, Tk]
    m_prev = m_ref[...]
    m_new = jnp.maximum(m_prev, jnp.max(scores, axis=-1, keepdims=True))
    # Guard against fully-masked KV tiles (m_prev == m_new == -inf) so future
    # attn_mask / key_padding_mask support does not produce NaNs.
    alpha = jnp.where(m_new == -jnp.inf, 0.0, jnp.exp(m_prev - m_new))
    p = jnp.exp(scores - m_new)
    l_ref[...] = alpha * l_ref[...] + jnp.sum(p, axis=-1, keepdims=True)
    acc_ref[...] = alpha * acc_ref[...] + jnp.einsum(
        "hts,shd->htd", p.astype(v.dtype), v,
        preferred_element_type=jnp.float32,
    )
    m_ref[...] = m_new

    @pl.when(kv == pl.num_programs(2) - 1)
    def _():
        inv_l = pl.reciprocal(l_ref[...], approx=True)   # [Hb, Tq, 1]
        out = acc_ref[...] * inv_l                       # [Hb, Tq, Hd] f32
        # Single lane-dense store (heads packed along lanes, one wide vst).
        o_ref[...] = jnp.concatenate(
            [out[h] for h in range(hb)], axis=-1
        ).astype(o_ref.dtype)


def flash_attention(q, k, v):
    t, bh, hd = q.shape
    s = k.shape[0]
    in_isz = jnp.dtype(q.dtype).itemsize
    out_isz = in_isz
    hb, tq, tk = _plan_flash_attn(bh, hd, t, s, in_isz, out_isz, _VMEM_BUDGET)
    grid = (bh // hb, t // tq, s // tk)
    cost = pl.CostEstimate(
        flops=4 * bh * t * s * hd,
        transcendentals=bh * t * s,
        bytes_accessed=(bh * (t + 2 * s) * hd * in_isz + bh * t * hd * out_isz),
    )
    # TODO(synk): consider pipeline_mode=pl.Buffered(3) on the K/V specs for
    #             v5e when the per-step compute is short (sweep 2 vs 3).
    return pl.pallas_call(
        _flash_kernel,
        out_shape=jax.ShapeDtypeStruct((t, bh * hd), q.dtype),
        grid=grid,
        in_specs=[
            pl.BlockSpec((tq, hb, hd), lambda i, j, kk: (j, i, 0)),
            pl.BlockSpec((tk, hb, hd), lambda i, j, kk: (kk, i, 0)),
            pl.BlockSpec((tk, hb, hd), lambda i, j, kk: (kk, i, 0)),
        ],
        out_specs=pl.BlockSpec((tq, hb * hd), lambda i, j, kk: (j, i)),
        scratch_shapes=[
            pltpu.VMEM((hb, tq, 1), jnp.float32),
            pltpu.VMEM((hb, tq, 1), jnp.float32),
            pltpu.VMEM((hb, tq, hd), jnp.float32),
        ],
        compiler_params=pltpu.CompilerParams(
            dimension_semantics=("parallel", "parallel", "arbitrary"),
            vmem_limit_bytes=_VMEM_LIMIT,
        ),
        cost_estimate=cost,
    )(q, k, v)


# ----------------------------------------------------------------------------
# Module wrapper
# ----------------------------------------------------------------------------
class MultiheadAttentionPallas:
    """Pallas implementation of BART MultiheadAttention (self-attn path).

    bf16 compute / f32 accumulation by default.  Use need_weights=False for
    the flash (no [B*H,T,S] materialization) hot path.
    """

    def __init__(self, embed_dim, num_heads, key, bias=True,
                 param_dtype=jnp.bfloat16):
        self.embed_dim = embed_dim
        self.num_heads = num_heads
        self.head_dim = embed_dim // num_heads
        assert self.head_dim * num_heads == embed_dim
        self.scaling = self.head_dim ** (-0.5)
        self.compute_dtype = param_dtype

        ks = jax.random.split(key, 8)
        bound = 1.0 / (embed_dim ** 0.5)

        def init_w(k):
            return jax.random.uniform(
                k, (embed_dim, embed_dim), jnp.float32, -bound, bound)

        def init_b(k):
            return jax.random.uniform(
                k, (embed_dim,), jnp.float32, -bound, bound)

        # PyTorch-layout f32 master parameters (also used by the reference).
        self.k_w, self.k_b = init_w(ks[0]), init_b(ks[1])
        self.v_w, self.v_b = init_w(ks[2]), init_b(ks[3])
        self.q_w, self.q_b = init_w(ks[4]), init_b(ks[5])
        self.o_w, self.o_b = init_w(ks[6]), init_b(ks[7])

        # Kernel-side parameters: fused QKV weight [E, 3E] (pre-transposed,
        # q-scaling folded in) in bf16; biases kept f32 (added in f32 inside
        # the kernels at negligible cost).
        self.w_qkv_t = jnp.concatenate(
            [self.q_w * self.scaling, self.k_w, self.v_w], axis=0
        ).T.astype(param_dtype)                                    # [E, 3E]
        self.b_qkv = jnp.concatenate(
            [self.q_b * self.scaling, self.k_b, self.v_b]
        ).reshape(1, -1).astype(jnp.float32)                       # [1, 3E]
        self.o_w_t = self.o_w.T.astype(param_dtype)                # [E, E]
        self.o_b2d = self.o_b.reshape(1, -1).astype(jnp.float32)   # [1, E]

    def __call__(self, query, need_weights=True):
        # query: [tgt_len, batch, embed_dim]
        tgt_len, bsz, embed_dim = query.shape
        h, hd = self.num_heads, self.head_dim

        # Fused Q/K/V projection; activations cast once to the bf16 MXU dtype.
        x2d = query.reshape(tgt_len * bsz, embed_dim).astype(self.compute_dtype)
        qkv = linear(x2d, self.w_qkv_t, self.b_qkv)                # [T*B, 3E]
        q2d = qkv[:, :embed_dim]
        k2d = qkv[:, embed_dim:2 * embed_dim]
        v2d = qkv[:, 2 * embed_dim:]

        # Cached K/V returned in the caller's dtype (PyTorch parity).
        new_keys = k2d.reshape(tgt_len, bsz, embed_dim).astype(query.dtype)
        new_values = v2d.reshape(tgt_len, bsz, embed_dim).astype(query.dtype)
        src_len = tgt_len

        # [T*B, E] -> [T, B*H, Hd]: metadata-only reshapes, no transposes.
        qh = q2d.reshape(tgt_len, bsz * h, hd)
        kh = k2d.reshape(src_len, bsz * h, hd)
        vh = v2d.reshape(src_len, bsz * h, hd)

        if need_weights:
            attn2d, attn_weights = attention_with_weights(qh, kh, vh)
            attn_weights = attn_weights.reshape(bsz, h, tgt_len, src_len)
        else:
            attn2d = flash_attention(qh, kh, vh)
            attn_weights = None

        # attn2d is [T, B*E] laid out (t, b, head, d): reshaping to [T*B, E]
        # is free; output projection emits the caller's dtype.
        out = linear(attn2d.reshape(tgt_len * bsz, embed_dim),
                     self.o_w_t, self.o_b2d, out_dtype=query.dtype)
        out = out.reshape(tgt_len, bsz, embed_dim)
        return out, attn_weights, new_keys, new_values


# ----------------------------------------------------------------------------
# Reference (pure JAX, f32) for a sanity check
# ----------------------------------------------------------------------------
def reference_forward(mha, query):
    tgt_len, bsz, e = query.shape
    h, hd = mha.num_heads, mha.head_dim
    x = query.reshape(-1, e)
    q = (x @ mha.q_w.T + mha.q_b) * mha.scaling
    k = x @ mha.k_w.T + mha.k_b
    v = x @ mha.v_w.T + mha.v_b
    qh = q.reshape(tgt_len, bsz * h, hd).transpose(1, 0, 2)
    kh = k.reshape(tgt_len, bsz * h, hd).transpose(1, 0, 2)
    vh = v.reshape(tgt_len, bsz * h, hd).transpose(1, 0, 2)
    s = jnp.einsum("btd,bsd->bts", qh, kh)
    w = jax.nn.softmax(s.astype(jnp.float32), axis=-1)
    o = jnp.einsum("bts,bsd->btd", w, vh)
    o = o.transpose(1, 0, 2).reshape(tgt_len, bsz, e)
    o = (o.reshape(-1, e) @ mha.o_w.T + mha.o_b).reshape(tgt_len, bsz, e)
    return (o, w.reshape(bsz, h, tgt_len, tgt_len),
            k.reshape(tgt_len, bsz, e), v.reshape(tgt_len, bsz, e))


if __name__ == "__main__":
    key = jax.random.PRNGKey(0)
    pkey, xkey = jax.random.split(key)

    tgt_len, bsz, embed_dim, num_heads = 8, 2, 32, 4
    mha = MultiheadAttentionPallas(embed_dim, num_heads, pkey)
    query = jax.random.normal(xkey, (tgt_len, bsz, embed_dim), jnp.float32)

    attn_out, attn_weights, new_k, new_v = mha(query)
    flash_out, _, _, _ = mha(query, need_weights=False)
    jax.block_until_ready((attn_out, attn_weights, new_k, new_v, flash_out))

    ref_out, ref_w, ref_k, ref_v = reference_forward(mha, query)
    # bf16 MXU operands (f32 accumulation) -> bf16-level tolerance vs the f32
    # reference; attention weights themselves are exact-f32-normalized.
    assert attn_out.dtype == query.dtype
    assert attn_weights.dtype == jnp.float32
    assert jnp.allclose(attn_out, ref_out, atol=3e-2, rtol=3e-2)
    assert jnp.allclose(flash_out, ref_out, atol=3e-2, rtol=3e-2)
    assert jnp.allclose(attn_weights, ref_w, atol=2e-2, rtol=2e-2)
    assert jnp.allclose(new_k, ref_k, atol=2e-2, rtol=2e-2)
    assert jnp.allclose(new_v, ref_v, atol=2e-2, rtol=2e-2)
    assert jnp.allclose(attn_weights.sum(-1), 1.0, atol=1e-3)
    assert attn_out.shape == (tgt_len, bsz, embed_dim)
    assert attn_weights.shape == (bsz, num_heads, tgt_len, tgt_len)

    print("KERNEL_OK")
</pallas_src>

<mosaic_0001>
module attributes {stable_mosaic.version = 11 : i64} {
  func.func @_linear_kernel(%arg0: i32, %arg1: i32, %arg2: i32, %arg3: memref<16x32xbf16, #tpu.memory_space<vmem>>, %arg4: memref<32x96xbf16, #tpu.memory_space<vmem>>, %arg5: memref<1x96xf32, #tpu.memory_space<vmem>>, %arg6: memref<16x96xbf16, #tpu.memory_space<vmem>>, %arg7: memref<16x96xf32, #tpu.memory_space<vmem>>) attributes {dimension_semantics = [#tpu.dimension_semantics<parallel>, #tpu.dimension_semantics<parallel>, #tpu.dimension_semantics<arbitrary>], iteration_bounds = array<i64: 1, 1, 1>, scalar_prefetch = 0 : i64, scratch_operands = 1 : i64, tpu.core_type = #tpu.core_type<tc>, window_params = [{transform_indices = @transform_0, window_bounds = array<i64: 16, 32>}, {transform_indices = @transform_1, window_bounds = array<i64: 32, 96>}, {transform_indices = @transform_2, window_bounds = array<i64: 1, 96>}, {transform_indices = @transform_3, window_bounds = array<i64: 16, 96>}]} {
    %c0_i32 = arith.constant 0 : i32
    %0 = arith.cmpi eq, %arg2, %c0_i32 : i32
    %1 = arith.extui %0 : i1 to i32
    %c0_i32_0 = arith.constant 0 : i32
    %2 = arith.cmpi ne, %1, %c0_i32_0 : i32
    scf.if %2 {
      %cst_10 = arith.constant 0.000000e+00 : f32
      %12 = vector.broadcast %cst_10 : f32 to vector<16x96xf32>
      %c0_11 = arith.constant 0 : index
      %c0_12 = arith.constant 0 : index
      %13 = vector.load %arg7[%c0_11, %c0_12] : memref<16x96xf32, #tpu.memory_space<vmem>>, vector<16x96xf32>
      tpu.vector_store %arg7[%c0_11, %c0_12], %12 {strides = array<i32>} : memref<16x96xf32, #tpu.memory_space<vmem>>, vector<16x96xf32>,
    } else {
    }
    %c0 = arith.constant 0 : index
    %c0_1 = arith.constant 0 : index
    %3 = vector.load %arg7[%c0, %c0_1] : memref<16x96xf32, #tpu.memory_space<vmem>>, vector<16x96xf32>
    %c0_2 = arith.constant 0 : index
    %c0_3 = arith.constant 0 : index
    %4 = vector.load %arg3[%c0_2, %c0_3] : memref<16x32xbf16, #tpu.memory_space<vmem>>, vector<16x32xbf16>
    %c0_4 = arith.constant 0 : index
    %c0_5 = arith.constant 0 : index
    %5 = vector.load %arg4[%c0_4, %c0_5] : memref<32x96xbf16, #tpu.memory_space<vmem>>, vector<32x96xbf16>
    %cst = arith.constant dense<0.000000e+00> : vector<16x96xf32>
    %6 = tpu.matmul %4, %5, %cst {dimension_numbers = #tpu.dot_dimension_numbers<[1], [0], [0], [1], [0, 0, 1, 1], [], []>} : vector<16x32xbf16>, vector<32x96xbf16>, vector<16x96xf32> -> vector<16x96xf32>
    %7 = arith.addf %3, %6 : vector<16x96xf32>
    %c0_6 = arith.constant 0 : index
    %c0_7 = arith.constant 0 : index
    %8 = vector.load %arg7[%c0_6, %c0_7] : memref<16x96xf32, #tpu.memory_space<vmem>>, vector<16x96xf32>
    tpu.vector_store %arg7[%c0_6, %c0_7], %7 {strides = array<i32>} : memref<16x96xf32, #tpu.memory_space<vmem>>, vector<16x96xf32>,
    %c0_i32_8 = arith.constant 0 : i32
    %9 = arith.cmpi eq, %arg2, %c0_i32_8 : i32
    %10 = arith.extui %9 : i1 to i32
    %c0_i32_9 = arith.constant 0 : i32
    %11 = arith.cmpi ne, %10, %c0_i32_9 : i32
    scf.if %11 {
      %c0_10 = arith.constant 0 : index
      %c0_11 = arith.constant 0 : index
      %12 = vector.load %arg7[%c0_10, %c0_11] : memref<16x96xf32, #tpu.memory_space<vmem>>, vector<16x96xf32>
      %c0_12 = arith.constant 0 : index
      %c0_13 = arith.constant 0 : index
      %13 = vector.load %arg5[%c0_12, %c0_13] : memref<1x96xf32, #tpu.memory_space<vmem>>, vector<1x96xf32>
      %14 = vector.broadcast %13 : vector<1x96xf32> to vector<16x96xf32>
      %15 = arith.addf %12, %14 : vector<16x96xf32>
      %16 = arith.truncf %15 : vector<16x96xf32> to vector<16x96xbf16>
      %c0_14 = arith.constant 0 : index
      %c0_15 = arith.constant 0 : index
      %17 = vector.load %arg6[%c0_14, %c0_15] : memref<16x96xbf16, #tpu.memory_space<vmem>>, vector<16x96xbf16>
      tpu.vector_store %arg6[%c0_14, %c0_15], %16 {strides = array<i32>} : memref<16x96xbf16, #tpu.memory_space<vmem>>, vector<16x96xbf16>,
    } else {
    }
    return
  }
  func.func @transform_0(%arg0: i32, %arg1: i32, %arg2: i32) -> (i32, i32) {
    %c0_i32 = arith.constant 0 : i32
    return %arg0, %arg2 : i32, i32
  }
  func.func @transform_1(%arg0: i32, %arg1: i32, %arg2: i32) -> (i32, i32) {
    %c0_i32 = arith.constant 0 : i32
    return %arg2, %arg1 : i32, i32
  }
  func.func @transform_2(%arg0: i32, %arg1: i32, %arg2: i32) -> (i32, i32) {
    %c0_i32 = arith.constant 0 : i32
    %c0_i32_0 = arith.constant 0 : i32
    return %c0_i32, %arg1 : i32, i32
  }
  func.func @transform_3(%arg0: i32, %arg1: i32, %arg2: i32) -> (i32, i32) {
    %c0_i32 = arith.constant 0 : i32
    return %arg0, %arg1 : i32, i32
  }
}

</mosaic_0001>

<bundles_post_ra>
// kernel: tpu_custom_call.1
= control target key start
LH: loop header
LB: loop body
LE: loop exit
PB: predicated region body
PF: predicated region fallthrough
CT: control target
= control target key end

     0   :  { %8 = vsyncpa [#allocation4], 0  ;;  %s317_s0 = inlined_call_operand.hbm [shape: bf16[16,32], index: 0, kind: input, shape index: {}]   ;;  %s318_s1 = inlined_call_operand.hbm [shape: bf16[32,96], index: 1, kind: input, shape index: {}]   ;;  %s319_s2 = inlined_call_operand.vmem [shape: f32[1,96], index: 2, kind: input, shape index: {}]   ;;  %s320_s3 = inlined_call_operand.hbm [shape: bf16[16,96], index: 3, kind: output, shape index: {}]  }
   0x1   :  { %9 = vsyncpa [#allocation7], 0 }
   0x2   :  { %10 = vsyncpa [#allocation5], 0  ;;  %s265_s12 = smov [#allocation3]  }
   0x3   :  { %s16_s13 = sshll.u32 %s265_s12, 4  ;;  %s17_s13 = int_to_ptr.vmem [resolvable:$true] %s16_s13 }
   0x4   :  { %s207_s14 = scalar_lea.vmem %s17_s13, 128  ;;  %p212_p1 = scmp.lt.s32.totalorder %s17_s13, %s17_s13 }
   0x5   :  { %p208_p0 = scmp.ne.s32.totalorder %s17_s13, %s207_s14  ;;  %p213_p2 = scmp.lt.s32.totalorder %s207_s14, %s207_s14 }
   0x7   :  { %p214_p3 = por %p213_p2, %p212_p1 }
   0x9   :  { %p215_p4 = pnand %p214_p3, %p208_p0 }
   0xb   :  { %218 = shalt.err (!%p215_p4)
}
   0xc   :  { %s266_s15 = smov 64   ;;  %s267_s16 = smov 4  }
   0xd   :  { %22 = dma.hbm_to_vmem [thread:$0]  %s317_s0, 128, %s17_s13, [#allocation4], %s266_s15, %s266_s15, %s267_s16  }
   0xe   :  { %s268_s19 = smov [#allocation6]  }
   0xf   :  { %s28_s20 = sshll.u32 %s268_s19, 4  ;;  %s29_s20 = int_to_ptr.vmem [resolvable:$true] %s28_s20 }
  0x10   :  { %s227_s21 = scalar_lea.vmem %s29_s20, 256  ;;  %p232_p6 = scmp.lt.s32.totalorder %s29_s20, %s29_s20 }
  0x11   :  { %p228_p5 = scmp.ne.s32.totalorder %s29_s20, %s227_s21  ;;  %p233_p7 = scmp.lt.s32.totalorder %s227_s21, %s227_s21 }
  0x13   :  { %p234_p8 = por %p233_p7, %p232_p6 }
  0x15   :  { %p235_p9 = pnand %p234_p8, %p228_p5 }
  0x17   :  { %238 = shalt.err (!%p235_p9)
}
  0x18   :  { %34 = dma.hbm_to_vmem [thread:$0]  %s318_s1, 256, %s29_s20, [#allocation7], %s266_s15, %s266_s15, %s267_s16  }
  0x19   :  { %259 = dma.done.wait [#allocation4], 128  }
  0x1a   :  { %260 = vsyncadd [#allocation4], 4294967168 }
  0x1b   :  { %261 = dma.done.wait [#allocation7], 256  }
  0x1c   :  { %262 = vsyncadd [#allocation7], 4294967040  ;;  %vm48_vm0 = vcmask 785408   ;;  %v269_v0 = vmov 0.0   ;;  %vm270_vm1 = vmmov 0   ;;  %v196_v1 = vld [vmem:[#allocation6 + $0x8] sm:$0xff]  }
  0x1d   :  { %49 = vst.msk [vmem:[#allocation2] sm:$0xff] %vm48_vm0, %v269_v0  ;;  %50 = vst.msk [vmem:[#allocation2 + $0x8] sm:$0xff] %vm48_vm0, %v269_v0  ;;  %181 = vmatprep.subr.bf16.mxu0 %v269_v0  ;;  %185 = vmatprep.mubr.msk.bf16.mxu0 %vm270_vm1, %v269_v0  ;;  %v197_v2 = vld [vmem:[#allocation6] sm:$0xff]   ;;  %v198_v3 = vld [vmem:[#allocation3] sm:$0xff]   ;;  %vm76_vm2 = vcmask 261120   ;;  %vm148_vm3 = vcmask 781312  }
  0x1e   :  { %182 = vmatpush3.bf16.msra.mxu0 %v196_v1  ;;  %v173_v12 = vld [vmem:[%s319_s2] ss:$0 sm:$0xff]  ;;  %s271_s24 = smov [#allocation8]  }
  0x1f   :  { %183 = vmatprep.subr.bf16.mxu0 %v269_v0  ;;  %s156_s25 = sshll.u32 %s271_s24, 4  ;;  %s157_s25 = int_to_ptr.vmem [resolvable:$true] %s156_s25 }
  0x20   :  { %s239_s26 = scalar_lea.vmem %s157_s25, 128  ;;  %p244_p11 = scmp.lt.s32.totalorder %s157_s25, %s157_s25 }
  0x21   :  { %p240_p10 = scmp.ne.s32.totalorder %s157_s25, %s239_s26  ;;  %p245_p12 = scmp.lt.s32.totalorder %s239_s26, %s239_s26 }
  0x22   :  { %184 = vmatpush3.bf16.msra.mxu0 %v197_v2 }
  0x23   :  { %p246_p13 = por %p245_p12, %p244_p11 }
  0x24   :  { %v51_v4 = vld [vmem:[#allocation2] sm:$0xff]  ;;  %v52_v8 = vld [vmem:[#allocation2 + $0x8] sm:$0xff] }
  0x25   :  { %186 = vmatmul.mubr.msk.bf16.vlgmr.msra.gmra.mxu0 %vm76_vm2, %v198_v3  ;;  %p247_p0 = pnand %p246_p13, %p240_p10 }
  0xe5   :  { %v114_v5 = vpop.f32.mrf.mxu0 }
  0xe6   :  { %v121_v6 = vadd.f32 %v114_v5, %v51_v4 }
  0xe7   :  { %v187_v7 = vpop.f32.mrf.mxu0 }
  0xe8   :  { %124 = vst.msk [vmem:[#allocation2] sm:$0xff] %vm48_vm0, %v121_v6 }
  0xe9   :  { %v117_v9 = vpop.f32.mrf.mxu0 }
  0xea   :  { %v122_v10 = vadd.f32 %v117_v9, %v52_v8 }
  0xeb   :  { %v188_v11 = vpop.f32.mrf.mxu0 }
  0xec   :  { %125 = vst.msk [vmem:[#allocation2 + $0x8] sm:$0xff] %vm48_vm0, %v122_v10 }
  0xef   :  { %v129_v13 = vld [vmem:[#allocation2] sm:$0xff] }
  0xf0   :  { %v138_v14 = vadd.f32 %v173_v12, %v129_v13 }
  0xf2   :  { %v176_v15 = vpack.c.bf16 %v138_v14, %v138_v14 }
  0xf3   :  { %v130_v16 = vld [vmem:[#allocation2 + $0x8] sm:$0xff] }
  0xf4   :  { %v139_v17 = vadd.f32 %v173_v12, %v130_v16  ;;  %149 = vst.msk [vmem:[#allocation8] sm:$0xf] %vm148_vm3, %v176_v15 }
  0xf6   :  { %v177_v18 = vpack.c.bf16 %v139_v17, %v139_v17 }
  0xf8   :  { %150 = vst.msk [vmem:[#allocation8 + $0x4] sm:$0xf] %vm148_vm3, %v177_v18 }
  0xf9   :  { %250 = shalt.err (!%p247_p0)
}
  0xfa   :  { %162 = dma.vmem_to_hbm [thread:$0]  %s157_s25, 128, %s320_s3, [#allocation5], %s266_s15, %s266_s15, %s267_s16  }
  0xfb   :  { %263 = dma.done.wait [#allocation5], 128  }
  0xfc   :  { %264 = vsyncadd [#allocation5], 4294967168 }
  0xfd   :  { %166 = vsyncpa [#allocation4], 1 }
  0xfe   :  { %167 = vsyncpa [#allocation7], 1 }
  0xff   :  { %168 = vsyncpa [#allocation5], 1 }

</bundles_post_ra>
